<compile_context>
chip_gen: v5e
topology: v5e:2x2
jax: 0.10.0
libtpu: 0.0.40
codegen_flags: <defaults>
</compile_context>

<pallas_src>
import functools

import jax
import jax.numpy as jnp
from jax import lax
from jax.experimental import pallas as pl
from jax.experimental.pallas import tpu as pltpu


# ---------------------------------------------------------------------------
# Tiling helpers
# ---------------------------------------------------------------------------
def _cdiv(a, b):
    return -(-a // b)


def _round_up(a, b):
    return _cdiv(a, b) * b


def _vmem_capacity_bytes():
    """Physical VMEM per TensorCore; conservative 64 MiB (v7x) fallback."""
    try:
        cap = int(pltpu.get_tpu_info().vmem_capacity_bytes)
        if cap > 0:
            return cap
    except Exception:
        pass
    return 64 * 1024 * 1024


def _choose_tiles(n_rows, d, itemsize, vmem_cap, force_tb=None, force_td=None):
    """Pick (row tile TB, lane tile TD, #lane tiles).

    Budget: 3 input streams x double buffering must fit ~45% of VMEM; the rest
    is headroom for elementwise temporaries and the compiler.  That yields
    ~4.8 MiB per input tile on 64 MiB parts (v7x) and ~9.6 MiB on 128 MiB parts
    (v5e/v6e), past the ~4 MiB knee where mem-bound kernels reach HBM roofline.
    """
    lane_pad = _round_up(d, 128)                        # VMEM lane padding
    budget = max(int(vmem_cap * 0.45), 6 * 8 * 128 * itemsize)
    per_buf = budget // 6

    # Lane (D) tiling only when even an 8-row, full-D tile blows the budget.
    if force_td is not None:
        td = min(_round_up(force_td, 128), lane_pad)
    elif 8 * lane_pad * itemsize > per_buf:
        td = max(128, (per_buf // (8 * itemsize)) // 128 * 128)
        td = min(td, lane_pad)
    else:
        td = lane_pad
    nd = _cdiv(d, td)
    if nd == 1:
        td = d                                          # block == full last dim

    # Row (batch) tiling: as large as the budget allows.
    row_cap = _round_up(max(n_rows, 1), 8)
    if force_tb is not None:
        tb = max(8, _round_up(force_tb, 8))
    else:
        bytes_per_row = _round_up(td, 128) * itemsize
        tb = max(8, (per_buf // bytes_per_row) // 8 * 8)
    tb = min(tb, row_cap)
    return tb, td, nd


# ---------------------------------------------------------------------------
# Kernels
# ---------------------------------------------------------------------------
def _spo_plus_partial_sum_kernel(c_hat_ref, c_ref, w_ref, part_ref, *,
                                 minimize, n_rows, d, tb, td,
                                 mask_rows, mask_lanes):
    """One (tb, td) tile -> scalar partial sum of per-element contributions.

    Per-element contribution: 2*c_hat*w - min(2*c_hat - c, 0)   (minimize)
    Summed over all elements; the -z term is added back in the wrapper.
    """
    c_hat = c_hat_ref[...].astype(jnp.float32)
    c = c_ref[...].astype(jnp.float32)
    w = w_ref[...].astype(jnp.float32)

    q = 2.0 * c_hat - c                                  # perturbed cost
    inner = jnp.minimum(q, 0.0) if minimize else jnp.maximum(q, 0.0)
    contrib = 2.0 * c_hat * w - inner                    # (tb, td)

    valid = None
    if mask_rows:   # last row tile may extend past the real batch -> garbage
        row = (lax.broadcasted_iota(jnp.int32, contrib.shape, 0)
               + pl.program_id(0) * tb)
        valid = row < n_rows
    if mask_lanes:  # last lane tile may extend past the real D -> garbage
        lane = (lax.broadcasted_iota(jnp.int32, contrib.shape, 1)
                + pl.program_id(1) * td)
        lane_ok = lane < d
        valid = lane_ok if valid is None else (valid & lane_ok)
    if valid is not None:
        contrib = jnp.where(valid, contrib, 0.0)

    part_ref[...] = jnp.sum(contrib).reshape(1, 1)


def _spo_plus_none_kernel(c_hat_ref, c_ref, w_ref, z_ref, loss_ref, acc_ref, *,
                          minimize, d, td, mask_lanes):
    """Per-sample SPO+ losses; accumulates over lane (D) tiles if tiled."""
    j = pl.program_id(1)

    @pl.when(j == 0)
    def _():
        acc_ref[...] = jnp.zeros_like(acc_ref)

    c_hat = c_hat_ref[...].astype(jnp.float32)
    c = c_ref[...].astype(jnp.float32)
    w = w_ref[...].astype(jnp.float32)

    q = 2.0 * c_hat - c
    inner = jnp.minimum(q, 0.0) if minimize else jnp.maximum(q, 0.0)
    contrib = 2.0 * c_hat * w - inner                    # (tb, td)
    if mask_lanes:
        lane = lax.broadcasted_iota(jnp.int32, contrib.shape, 1) + j * td
        contrib = jnp.where(lane < d, contrib, 0.0)
    acc_ref[...] += jnp.sum(contrib, axis=1, keepdims=True)

    @pl.when(j == pl.num_programs(1) - 1)
    def _():
        loss_ref[...] = acc_ref[...] - z_ref[...].astype(jnp.float32)


# ---------------------------------------------------------------------------
# Wrapper
# ---------------------------------------------------------------------------
def spo_plus_loss(pred_cost, true_cost, true_sol, true_obj,
                  reduction="mean", minimize=True, *,
                  _force_tb=None, _force_td=None):
    """JAX/Pallas equivalent of SPOPlus.forward (unit-box LP optmodel)."""
    B, D = pred_cost.shape
    assert true_cost.shape == (B, D)
    assert true_sol.shape == (B, D)
    assert true_obj.shape == (B, 1)

    itemsize = jnp.dtype(pred_cost.dtype).itemsize
    vmem_cap = _vmem_capacity_bytes()
    vmem_limit = int(min(vmem_cap * 0.85, 100 * 1024 * 1024))

    if reduction in ("mean", "sum"):
        c_hat, c, w = pred_cost, true_cost, true_sol
        # Lane-dense relayout for narrow D: the global sum ignores row
        # boundaries, so a free contiguous reshape to 128 lanes keeps vregs and
        # VMEM fully utilized.
        if D % 128 != 0 and (B * D) % 128 == 0:
            n_rows, d_eff = (B * D) // 128, 128
            c_hat = c_hat.reshape(n_rows, d_eff)
            c = c.reshape(n_rows, d_eff)
            w = w.reshape(n_rows, d_eff)
        else:
            n_rows, d_eff = B, D

        tb, td, nd = _choose_tiles(n_rows, d_eff, itemsize, vmem_cap,
                                   _force_tb, _force_td)
        nb = _cdiv(n_rows, tb)
        mask_rows = (n_rows % tb) != 0
        mask_lanes = nd > 1

        def partial_idx(i, j):
            return (i * nd + j, 0)

        in_spec = pl.BlockSpec((tb, td), lambda i, j: (i, j))
        partials = pl.pallas_call(
            functools.partial(_spo_plus_partial_sum_kernel, minimize=minimize,
                              n_rows=n_rows, d=d_eff, tb=tb, td=td,
                              mask_rows=mask_rows, mask_lanes=mask_lanes),
            out_shape=jax.ShapeDtypeStruct((nb * nd, 1), jnp.float32),
            grid=(nb, nd),
            in_specs=[in_spec, in_spec, in_spec],
            out_specs=pl.BlockSpec((1, 1), partial_idx),
            compiler_params=pltpu.CompilerParams(
                dimension_semantics=("parallel", "parallel"),
                vmem_limit_bytes=vmem_limit),
        )(c_hat, c, w)

        # loss_i = sum_d(contrib_i) - z_i  =>  sum_i loss_i = sum(partials) - sum(z)
        total = jnp.sum(partials) - jnp.sum(true_obj.astype(jnp.float32))
        if reduction == "mean":
            return total / jnp.float32(B)
        return total

    elif reduction == "none":
        tb, td, nd = _choose_tiles(B, D, itemsize, vmem_cap,
                                   _force_tb, _force_td)
        nb = _cdiv(B, tb)
        mask_lanes = nd > 1

        in_spec = pl.BlockSpec((tb, td), lambda i, j: (i, j))
        col_spec = pl.BlockSpec((tb, 1), lambda i, j: (i, 0))
        per_sample = pl.pallas_call(
            functools.partial(_spo_plus_none_kernel, minimize=minimize,
                              d=D, td=td, mask_lanes=mask_lanes),
            out_shape=jax.ShapeDtypeStruct((B, 1), jnp.float32),
            grid=(nb, nd),
            in_specs=[in_spec, in_spec, in_spec, col_spec],
            out_specs=col_spec,
            scratch_shapes=[pltpu.VMEM((tb, 1), jnp.float32)],
            compiler_params=pltpu.CompilerParams(
                dimension_semantics=("parallel", "arbitrary"),
                vmem_limit_bytes=vmem_limit),
        )(pred_cost, true_cost, true_sol, true_obj)
        return per_sample

    else:
        raise ValueError("No reduction '{}'.".format(reduction))


# ---------------------------------------------------------------------------
# Reference + tests
# ---------------------------------------------------------------------------
def spo_plus_reference(pred_cost, true_cost, true_sol, true_obj,
                       reduction="mean", minimize=True):
    q = 2.0 * pred_cost - true_cost
    if minimize:
        z_hat = jnp.sum(jnp.minimum(q, 0.0), axis=1, keepdims=True)
    else:
        z_hat = jnp.sum(jnp.maximum(q, 0.0), axis=1, keepdims=True)
    loss = (-z_hat
            + 2.0 * jnp.sum(pred_cost * true_sol, axis=1, keepdims=True)
            - true_obj)
    if reduction == "mean":
        return jnp.mean(loss)
    if reduction == "sum":
        return jnp.sum(loss)
    return loss


if __name__ == "__main__":
    root = jax.random.PRNGKey(0)

    def make_inputs(key, B, D):
        k1, k2 = jax.random.split(key)
        pred_cost = jax.random.normal(k1, (B, D), dtype=jnp.float32)
        true_cost = jax.random.normal(k2, (B, D), dtype=jnp.float32)
        true_sol = jnp.where(true_cost < 0.0, 1.0, 0.0).astype(jnp.float32)
        true_obj = jnp.sum(true_cost * true_sol, axis=1, keepdims=True)
        return pred_cost, true_cost, true_sol, true_obj

    def check(B, D, key, force_tb=None, force_td=None, minimize=True):
        inputs = make_inputs(key, B, D)
        for reduction in ("mean", "sum", "none"):
            out = spo_plus_loss(*inputs, reduction=reduction, minimize=minimize,
                                _force_tb=force_tb, _force_td=force_td)
            out = jax.block_until_ready(out)
            ref = spo_plus_reference(*inputs, reduction=reduction,
                                     minimize=minimize)
            assert jnp.allclose(out, ref, rtol=1e-4, atol=1e-3), (
                B, D, reduction, minimize, out, ref)

    k0, k1, k2, k3 = jax.random.split(root, 4)

    # 1) Module demo shapes, auto-chosen tiles (single tile on both axes).
    check(8, 32, k0)
    # 2) Forced tiny tiles: multiple row and lane tiles with partial (masked)
    #    tails on both axes, for both the fused-sum and 'none' paths.
    check(20, 200, k1, force_tb=8, force_td=128)
    # 3) Lane-dense reshape path (D=32 -> 128 lanes) with a partial last row
    #    tile in the fused-sum path and multiple output blocks in 'none'.
    check(48, 32, k2, force_tb=8)
    # 4) Maximization variant.
    check(16, 96, k3, minimize=False)

    print("KERNEL_OK")
</pallas_src>

<mosaic_0001>
module attributes {stable_mosaic.version = 11 : i64} {
  func.func @_spo_plus_partial_sum_kernel(%arg0: i32, %arg1: i32, %arg2: memref<8x128xf32, #tpu.memory_space<vmem>>, %arg3: memref<8x128xf32, #tpu.memory_space<vmem>>, %arg4: memref<8x128xf32, #tpu.memory_space<vmem>>, %arg5: memref<1x1xf32, #tpu.memory_space<vmem>>) attributes {dimension_semantics = [#tpu.dimension_semantics<parallel>, #tpu.dimension_semantics<parallel>], iteration_bounds = array<i64: 1, 1>, scalar_prefetch = 0 : i64, scratch_operands = 0 : i64, tpu.core_type = #tpu.core_type<tc>, window_params = [{transform_indices = @transform_0, window_bounds = array<i64: 8, 128>}, {transform_indices = @transform_1, window_bounds = array<i64: 8, 128>}, {transform_indices = @transform_2, window_bounds = array<i64: 8, 128>}, {transform_indices = @transform_3, window_bounds = array<i64: 1, 1>}]} {
    %c0 = arith.constant 0 : index
    %c0_0 = arith.constant 0 : index
    %0 = vector.load %arg2[%c0, %c0_0] : memref<8x128xf32, #tpu.memory_space<vmem>>, vector<8x128xf32>
    %c0_1 = arith.constant 0 : index
    %c0_2 = arith.constant 0 : index
    %1 = vector.load %arg3[%c0_1, %c0_2] : memref<8x128xf32, #tpu.memory_space<vmem>>, vector<8x128xf32>
    %c0_3 = arith.constant 0 : index
    %c0_4 = arith.constant 0 : index
    %2 = vector.load %arg4[%c0_3, %c0_4] : memref<8x128xf32, #tpu.memory_space<vmem>>, vector<8x128xf32>
    %cst = arith.constant 2.000000e+00 : f32
    %3 = vector.broadcast %cst : f32 to vector<8x128xf32>
    %4 = arith.mulf %3, %0 : vector<8x128xf32>
    %5 = arith.subf %4, %1 : vector<8x128xf32>
    %cst_5 = arith.constant 0.000000e+00 : f32
    %6 = vector.broadcast %cst_5 : f32 to vector<8x128xf32>
    %7 = arith.minimumf %5, %6 : vector<8x128xf32>
    %cst_6 = arith.constant 2.000000e+00 : f32
    %8 = vector.broadcast %cst_6 : f32 to vector<8x128xf32>
    %9 = arith.mulf %8, %0 : vector<8x128xf32>
    %10 = arith.mulf %9, %2 : vector<8x128xf32>
    %11 = arith.subf %10, %7 : vector<8x128xf32>
    %12 = tpu.iota {dimensions = array<i32: 0>} : vector<8x128xi32>
    %c8_i32 = arith.constant 8 : i32
    %13 = arith.muli %arg0, %c8_i32 : i32
    %14 = vector.broadcast %13 : i32 to vector<8x128xi32>
    %15 = arith.addi %12, %14 : vector<8x128xi32>
    %c2_i32 = arith.constant 2 : i32
    %16 = vector.broadcast %c2_i32 : i32 to vector<8x128xi32>
    %17 = arith.cmpi slt, %15, %16 : vector<8x128xi32>
    %cst_7 = arith.constant 0.000000e+00 : f32
    %18 = vector.broadcast %cst_7 : f32 to vector<8x128xf32>
    %19 = arith.select %17, %11, %18 : vector<8x128xi1>, vector<8x128xf32>
    %20 = vector.shape_cast %19 : vector<8x128xf32> to vector<1x8x128xf32>
    %cst_8 = arith.constant dense<0.000000e+00> : vector<1xf32>
    %21 = vector.multi_reduction <add>, %20, %cst_8 [1, 2] : vector<1x8x128xf32> to vector<1xf32>
    %22 = vector.shape_cast %21 : vector<1xf32> to vector<1x1x1xf32>
    %23 = vector.extract %22[0, 0, 0] : f32 from vector<1x1x1xf32>
    %24 = vector.broadcast %23 : f32 to vector<1x1xf32>
    %c0_9 = arith.constant 0 : index
    %c0_10 = arith.constant 0 : index
    %25 = vector.load %arg5[%c0_9, %c0_10] : memref<1x1xf32, #tpu.memory_space<vmem>>, vector<1x1xf32>
    tpu.vector_store %arg5[%c0_9, %c0_10], %24 {strides = array<i32>} : memref<1x1xf32, #tpu.memory_space<vmem>>, vector<1x1xf32>,
    return
  }
  func.func @transform_0(%arg0: i32, %arg1: i32) -> (i32, i32) {
    %c0_i32 = arith.constant 0 : i32
    return %arg0, %arg1 : i32, i32
  }
  func.func @transform_1(%arg0: i32, %arg1: i32) -> (i32, i32) {
    %c0_i32 = arith.constant 0 : i32
    return %arg0, %arg1 : i32, i32
  }
  func.func @transform_2(%arg0: i32, %arg1: i32) -> (i32, i32) {
    %c0_i32 = arith.constant 0 : i32
    return %arg0, %arg1 : i32, i32
  }
  func.func @transform_3(%arg0: i32, %arg1: i32) -> (i32, i32) {
    %c1_i32 = arith.constant 1 : i32
    %0 = arith.muli %arg0, %c1_i32 : i32
    %1 = arith.addi %0, %arg1 : i32
    %c0_i32 = arith.constant 0 : i32
    %c0_i32_0 = arith.constant 0 : i32
    return %1, %c0_i32 : i32, i32
  }
}

</mosaic_0001>

<bundles_post_ra>
// kernel: tpu_custom_call.1
= control target key start
LH: loop header
LB: loop body
LE: loop exit
PB: predicated region body
PF: predicated region fallthrough
CT: control target
= control target key end

     0   :  { %8 = vsyncpa [#allocation3], 0  ;;  %s258_s0 = inlined_call_operand.hbm [shape: f32[2,128], index: 0, kind: input, shape index: {}]   ;;  %s259_s1 = inlined_call_operand.hbm [shape: f32[2,128], index: 1, kind: input, shape index: {}]   ;;  %s260_s2 = inlined_call_operand.hbm [shape: f32[2,128], index: 2, kind: input, shape index: {}]   ;;  %s261_s3 = inlined_call_operand.hbm [shape: f32[1,1], index: 3, kind: output, shape index: {}]  }
   0x1   :  { %9 = vsyncpa [#allocation6], 0 }
   0x2   :  { %10 = vsyncpa [#allocation4], 0 }
   0x3   :  { %14 = vsyncadd [#allocation3], 96  ;;  %s15_s14 = sshll.u32 %s258_s0, 4  ;;  %s220_s15 = smov [#allocation2]   ;;  %s16_s14 = int_to_ptr.hbm [resolvable:$true] %s15_s14 }
   0x4   :  { %s17_s16 = sshll.u32 %s220_s15, 4  ;;  %s221_s17 = smov 32   ;;  %s18_s16 = int_to_ptr.vmem [resolvable:$true] %s17_s16 }
   0x5   :  { %s222_s18 = smov 2  }
   0x6   :  { %23 = dma.hbm_to_vmem [thread:$0]  %s16_s14, 32, %s18_s16, [#allocation3], %s221_s17, %s221_s17, %s222_s18  }
   0x7   :  { %27 = vsyncadd [#allocation6], 96  ;;  %s28_s21 = sshll.u32 %s259_s1, 4  ;;  %s223_s22 = smov [#allocation5]   ;;  %s29_s21 = int_to_ptr.hbm [resolvable:$true] %s28_s21 }
   0x8   :  { %s30_s23 = sshll.u32 %s223_s22, 4  ;;  %s31_s23 = int_to_ptr.vmem [resolvable:$true] %s30_s23 }
   0x9   :  { %36 = dma.hbm_to_vmem [thread:$0]  %s29_s21, 32, %s31_s23, [#allocation6], %s221_s17, %s221_s17, %s222_s18  }
   0xa   :  { %40 = vsyncadd [#allocation6], 96  ;;  %s41_s25 = sshll.u32 %s260_s2, 4  ;;  %s224_s26 = smov [#allocation7]   ;;  %s42_s25 = int_to_ptr.hbm [resolvable:$true] %s41_s25 }
   0xb   :  { %s43_s27 = sshll.u32 %s224_s26, 4  ;;  %s44_s27 = int_to_ptr.vmem [resolvable:$true] %s43_s27 }
   0xc   :  { %49 = dma.hbm_to_vmem [thread:$0]  %s42_s25, 32, %s44_s27, [#allocation6], %s221_s17, %s221_s17, %s222_s18  }
   0xd   :  { %214 = dma.done.wait [#allocation3], 128  }
   0xe   :  { %215 = vsyncadd [#allocation3], 4294967168 }
   0xf   :  { %216 = dma.done.wait [#allocation6], 256  }
  0x10   :  { %217 = vsyncadd [#allocation6], 4294967040  ;;  %v71_v0 = vlaneseq  ;;  %v63_v1 = vld [vmem:[#allocation2] sm:$0xff]  ;;  %v64_v2 = vld [vmem:[#allocation5] sm:$0xff]  ;;  %s225_s1 = smov [#allocation8]   ;;  %s99_s30 = sshll.u32 %s261_s3, 4  ;;  %s100_s30 = int_to_ptr.hbm [resolvable:$true] %s99_s30 }
  0x11   :  { %v65_v3 = vld [vmem:[#allocation7] sm:$0xff]  ;;  %v66_v4 = vmul.f32 2.0, %v63_v1  ;;  %s97_s2 = sshll.u32 %s225_s1, 4  ;;  %vm88_vm1 = vcmask 0   ;;  %s98_s2 = int_to_ptr.vmem [resolvable:$true] %s97_s2 }
  0x12   :  { %v72_v5 = vshrl.u32 %v71_v0, 7 }
  0x13   :  { %v67_v6 = vsub.f32 %v66_v4, %v64_v2  ;;  %v69_v7 = vmul.f32 %v66_v4, %v65_v3 }
  0x14   :  { %vm76_vm0 = vcmp.lt.s32.totalorder %v72_v5, 2 }
  0x15   :  { %v68_v8 = vmin.f32 %v67_v6, 0.0 }
  0x17   :  { %v70_v9 = vsub.f32 %v69_v7, %v68_v8 }
  0x19   :  { %v77_v10 = vsel %vm76_vm0, %v70_v9, 0.0 }
  0x1a   :  { %78 = vadd.xlane.f32.xlu0 %v77_v10 }
  0x8d   :  { %v79_v11 = vpop.xlane.xlu0 %78 }
  0x8e   :  { %v80_v12 = vrot.slane %v79_v11, 4 }
  0x90   :  { %v81_v13 = vadd.f32 %v80_v12, %v79_v11 }
  0x92   :  { %v82_v14 = vrot.slane %v81_v13, 2 }
  0x94   :  { %v83_v15 = vadd.f32 %v82_v14, %v81_v13 }
  0x96   :  { %v84_v16 = vrot.slane %v83_v15, 1 }
  0x98   :  { %v85_v17 = vadd.f32 %v84_v16, %v83_v15 }
  0x9a   :  { %110 = vpush %v85_v17 }
  0xcb   :  { %s111_s4 = spop %110 }
  0xcc   :  { %v87_v18 = vstv %s111_s4 }
  0xcd   :  { %89 = vst.msk [vmem:[#allocation8] sm:$0x1] %vm88_vm1, %v87_v18 }
  0xce   :  { %102 = dma.vmem_to_hbm [thread:$0]  %s98_s2, 16, %s100_s30, [#allocation4]  }
  0xcf   :  { %218 = dma.done.wait [#allocation4], 16  }
  0xd0   :  { %219 = vsyncadd [#allocation4], 4294967280 }
  0xd1   :  { %107 = vsyncpa [#allocation3], 1 }
  0xd2   :  { %108 = vsyncpa [#allocation6], 1 }
  0xd3   :  { %109 = vsyncpa [#allocation4], 1 }

</bundles_post_ra>
